<compile_context>
chip_gen: v5e
topology: v5e:2x2
jax: 0.10.0
libtpu: 0.0.40
codegen_flags: <defaults>
</compile_context>

<pallas_src>
import numpy as np
import jax
import jax.numpy as jnp
from jax import lax
from jax.experimental import pallas as pl
from jax.experimental.pallas import tpu as pltpu

KH = KW = 3
EPS = 1e-5


# ---------------------------------------------------------------------------
# Wrapper-side constant prep (all static except the weight banding einsum)
# ---------------------------------------------------------------------------
def _banded_weights_cat(w, width):
    """w: (KH, KW, Cin, Cout) HWIO -> (W*Cin, KH*W*Cout).

    For kernel row kh, columns [kh*W*Cout:(kh+1)*W*Cout] form a banded matrix so
    that a lane-dense slab (rows, W*Cin) @ m performs the 3-tap 'same' conv along
    W (including its zero padding) for that kernel row."""
    kh_, kw_, cin, cout = w.shape
    wi = np.arange(width)[None, :, None]          # input column
    wo = np.arange(width)[None, None, :]          # output column
    kw = np.arange(kw_)[:, None, None]            # tap index
    sel = jnp.asarray((wi - wo + 1 == kw).astype(np.float32))   # (KW, W, W), static
    m = jnp.einsum("kio,hkcd->ichod", sel, w)     # (W, Cin, KH, W, Cout)
    return m.reshape(width * cin, kh_ * width * cout)


def _h_shift_mats(n, h, kh_):
    """(KH, N*H, N*H) 0/1 matrices: S[kh] @ Y selects input row h_out + kh - 1 of
    the same batch (H 'same' zero padding and batch block-diagonality baked in)."""
    ro = np.arange(n * h)
    s = np.zeros((kh_, n * h, n * h), np.float32)
    for k in range(kh_):
        hi = ro % h + k - 1
        valid = (hi >= 0) & (hi < h)
        src = (ro // h) * h + hi
        s[k, ro[valid], src[valid]] = 1.0
    return s


def _channel_gather(width, c):
    """(W*C, C) 0/1 matrix: column c sums lanes w*C + c (per-channel reduce)."""
    g = np.zeros((width * c, c), np.float32)
    g[np.arange(width * c), np.arange(width * c) % c] = 1.0
    return g


# ---------------------------------------------------------------------------
# Fused kernel: conv1 -> BN1(+stats) -> ReLU -> conv2 -> BN2(+stats) -> ReLU
# ---------------------------------------------------------------------------
def _make_kernel(kh, wc1, wc2, inv_count):
    def kernel(x_ref, m1_ref, m2_ref, s_ref,
               g1_ref, g1t_ref, g2_ref, g2t_ref,
               ga1_ref, be1_ref, ga2_ref, be2_ref, o_ref):

        def conv(a, m_ref, wc):
            # One banded matmul for all W taps / W padding, then KH tiny shift
            # matmuls for the H taps / H padding (all aligned, all MXU).
            y = jnp.dot(a, m_ref[...], preferred_element_type=jnp.float32)
            acc = jnp.dot(s_ref[0], y[:, :wc], preferred_element_type=jnp.float32)
            for k in range(1, kh):
                acc = acc + jnp.dot(s_ref[k], y[:, k * wc:(k + 1) * wc],
                                    preferred_element_type=jnp.float32)
            return acc

        def bn_relu(acc, g_ref, gt_ref, ga_ref, be_ref):
            # Biased batch stats (training-mode BN), per channel, fully in-kernel.
            col = jnp.concatenate(
                [jnp.sum(acc, axis=0, keepdims=True),
                 jnp.sum(acc * acc, axis=0, keepdims=True)], axis=0)   # (2, W*C)
            st = jnp.dot(col, g_ref[...],
                         preferred_element_type=jnp.float32)          # (2, C)
            mean = st[0:1, :] * inv_count
            # E[x^2]-E[x]^2 is cancellation-prone for large-mean data; fine at this
            # scale/tolerance (guarded with max(.,0)).
            var = jnp.maximum(st[1:2, :] * inv_count - mean * mean, 0.0)
            scale = ga_ref[...] * lax.rsqrt(var + EPS)
            shift = be_ref[...] - mean * scale
            aff = jnp.concatenate([scale, shift], axis=0)              # (2, C)
            aff_w = jnp.dot(aff, gt_ref[...],
                            preferred_element_type=jnp.float32)        # (2, W*C)
            return jnp.maximum(acc * aff_w[0:1, :] + aff_w[1:2, :], 0.0)

        a1 = conv(x_ref[...], m1_ref, wc1)
        y1 = bn_relu(a1, g1_ref, g1t_ref, ga1_ref, be1_ref)
        a2 = conv(y1, m2_ref, wc2)
        o_ref[...] = bn_relu(a2, g2_ref, g2t_ref,
                             ga2_ref, be2_ref).astype(o_ref.dtype)
    return kernel


def _fs(shape):
    """Full-array BlockSpec for grid=(1,)."""
    return pl.BlockSpec(shape, lambda i, _s=shape: (0,) * len(_s))


# ---------------------------------------------------------------------------
# Full block
# ---------------------------------------------------------------------------
def unet2d_block(x_nchw, params):
    n, cin, h, w = x_nchw.shape
    cmid = params["w1"].shape[-1]
    cout = params["w2"].shape[-1]
    wc1, wc2 = w * cmid, w * cout
    inv_count = 1.0 / float(n * h * w)

    # TODO(synk): fold these entry/exit layout transposes (NCHW <-> lane-dense)
    # into the kernel; each is one tiny XLA op at this size.
    xf = jnp.transpose(x_nchw, (0, 2, 3, 1)).reshape(n * h, w * cin)

    m1 = _banded_weights_cat(params["w1"], w)          # (W*Cin,  KH*W*Cmid)
    m2 = _banded_weights_cat(params["w2"], w)          # (W*Cmid, KH*W*Cout)
    s = jnp.asarray(_h_shift_mats(n, h, KH))           # (KH, N*H, N*H) constant
    g1 = _channel_gather(w, cmid)
    g2 = _channel_gather(w, cout)

    args = (xf, m1, m2, s,
            jnp.asarray(g1), jnp.asarray(g1.T),
            jnp.asarray(g2), jnp.asarray(g2.T),
            params["gamma1"].reshape(1, cmid), params["beta1"].reshape(1, cmid),
            params["gamma2"].reshape(1, cout), params["beta2"].reshape(1, cout))

    # conv biases b1/b2 intentionally omitted: training-mode BN mean subtraction
    # cancels any per-channel constant bias exactly.
    out = pl.pallas_call(
        _make_kernel(KH, wc1, wc2, inv_count),
        out_shape=jax.ShapeDtypeStruct((n * h, wc2), jnp.float32),
        grid=(1,),
        in_specs=[_fs(a.shape) for a in args],
        out_specs=_fs((n * h, wc2)),
        compiler_params=pltpu.CompilerParams(
            dimension_semantics=("arbitrary",)),
    )(*args)

    return jnp.transpose(out.reshape(n, h, w, cout), (0, 3, 1, 2))


# ---------------------------------------------------------------------------
# Parameter init (shapes match nn.Conv2d / nn.BatchNorm2d of the module)
# ---------------------------------------------------------------------------
def init_params(key, cin, cmid, cout):
    k1, k2, k3, k4 = jax.random.split(key, 4)
    bound1 = 1.0 / jnp.sqrt(cin * KH * KW)
    bound2 = 1.0 / jnp.sqrt(cmid * KH * KW)
    return {
        # weights stored as HWIO (Cout last)
        "w1": jax.random.uniform(k1, (KH, KW, cin, cmid), jnp.float32,
                                 -bound1, bound1),
        # b1/b2 kept for the reference; the kernel path drops them (cancelled by
        # training-mode BN mean subtraction).
        "b1": jax.random.uniform(k2, (cmid,), jnp.float32, -bound1, bound1),
        "w2": jax.random.uniform(k3, (KH, KW, cmid, cout), jnp.float32,
                                 -bound2, bound2),
        "b2": jax.random.uniform(k4, (cout,), jnp.float32, -bound2, bound2),
        # BatchNorm2d init: weight = 1, bias = 0
        "gamma1": jnp.ones((cmid,), jnp.float32),
        "beta1": jnp.zeros((cmid,), jnp.float32),
        "gamma2": jnp.ones((cout,), jnp.float32),
        "beta2": jnp.zeros((cout,), jnp.float32),
    }


# Pure-JAX reference (same math, XLA conv, bias included) for a correctness check.
def reference(x_nchw, params, eps=EPS):
    x = jnp.transpose(x_nchw, (0, 2, 3, 1))

    def conv(x, w, b):
        y = lax.conv_general_dilated(
            x, w, (1, 1), "SAME",
            dimension_numbers=("NHWC", "HWIO", "NHWC"))
        return y + b

    def bnr(y, g, b):
        m = jnp.mean(y, axis=(0, 1, 2))
        v = jnp.var(y, axis=(0, 1, 2))
        return jnp.maximum((y - m) / jnp.sqrt(v + eps) * g + b, 0.0)

    y = conv(x, params["w1"], params["b1"])
    y = bnr(y, params["gamma1"], params["beta1"])
    y = conv(y, params["w2"], params["b2"])
    y = bnr(y, params["gamma2"], params["beta2"])
    return jnp.transpose(y, (0, 3, 1, 2))


if __name__ == "__main__":
    key = jax.random.PRNGKey(0)
    kx, kp = jax.random.split(key)

    N, Cin, H, W = 2, 4, 16, 16          # input in NCHW, like the PyTorch module
    Cmid, Cout = 8, 8                    # initial_filters=4, end_filters=8

    x = jax.random.normal(kx, (N, Cin, H, W), jnp.float32)
    params = init_params(kp, Cin, Cmid, Cout)

    out = jax.jit(unet2d_block)(x, params)
    out = jax.block_until_ready(out)

    ref = reference(x, params)
    assert out.shape == (N, Cout, H, W)
    err = float(jnp.max(jnp.abs(out - ref)))
    assert jnp.allclose(out, ref, atol=2e-4, rtol=2e-4), f"max abs err {err}"

    print("KERNEL_OK")
</pallas_src>

<mosaic_0001>
module attributes {stable_mosaic.version = 11 : i64} {
  func.func @kernel(%arg0: i32, %arg1: memref<32x64xf32, #tpu.memory_space<vmem>>, %arg2: memref<64x384xf32, #tpu.memory_space<vmem>>, %arg3: memref<128x384xf32, #tpu.memory_space<vmem>>, %arg4: memref<3x32x32xf32, #tpu.memory_space<vmem>>, %arg5: memref<128x8xf32, #tpu.memory_space<vmem>>, %arg6: memref<8x128xf32, #tpu.memory_space<vmem>>, %arg7: memref<128x8xf32, #tpu.memory_space<vmem>>, %arg8: memref<8x128xf32, #tpu.memory_space<vmem>>, %arg9: memref<1x8xf32, #tpu.memory_space<vmem>>, %arg10: memref<1x8xf32, #tpu.memory_space<vmem>>, %arg11: memref<1x8xf32, #tpu.memory_space<vmem>>, %arg12: memref<1x8xf32, #tpu.memory_space<vmem>>, %arg13: memref<32x128xf32, #tpu.memory_space<vmem>>) attributes {dimension_semantics = [#tpu.dimension_semantics<arbitrary>], iteration_bounds = array<i64: 1>, scalar_prefetch = 0 : i64, scratch_operands = 0 : i64, tpu.core_type = #tpu.core_type<tc>, window_params = [{pipeline_mode = #tpu.pipeline_mode<synchronous>, transform_indices = @transform_0, window_bounds = array<i64: 32, 64>}, {pipeline_mode = #tpu.pipeline_mode<synchronous>, transform_indices = @transform_1, window_bounds = array<i64: 64, 384>}, {pipeline_mode = #tpu.pipeline_mode<synchronous>, transform_indices = @transform_2, window_bounds = array<i64: 128, 384>}, {pipeline_mode = #tpu.pipeline_mode<synchronous>, transform_indices = @transform_3, window_bounds = array<i64: 3, 32, 32>}, {pipeline_mode = #tpu.pipeline_mode<synchronous>, transform_indices = @transform_4, window_bounds = array<i64: 128, 8>}, {pipeline_mode = #tpu.pipeline_mode<synchronous>, transform_indices = @transform_5, window_bounds = array<i64: 8, 128>}, {pipeline_mode = #tpu.pipeline_mode<synchronous>, transform_indices = @transform_6, window_bounds = array<i64: 128, 8>}, {pipeline_mode = #tpu.pipeline_mode<synchronous>, transform_indices = @transform_7, window_bounds = array<i64: 8, 128>}, {pipeline_mode = #tpu.pipeline_mode<synchronous>, transform_indices = @transform_8, window_bounds = array<i64: 1, 8>}, {pipeline_mode = #tpu.pipeline_mode<synchronous>, transform_indices = @transform_9, window_bounds = array<i64: 1, 8>}, {pipeline_mode = #tpu.pipeline_mode<synchronous>, transform_indices = @transform_10, window_bounds = array<i64: 1, 8>}, {pipeline_mode = #tpu.pipeline_mode<synchronous>, transform_indices = @transform_11, window_bounds = array<i64: 1, 8>}, {pipeline_mode = #tpu.pipeline_mode<synchronous>, transform_indices = @transform_12, window_bounds = array<i64: 32, 128>}]} {
    %c0 = arith.constant 0 : index
    %c0_0 = arith.constant 0 : index
    %0 = vector.load %arg1[%c0, %c0_0] : memref<32x64xf32, #tpu.memory_space<vmem>>, vector<32x64xf32>
    %c0_1 = arith.constant 0 : index
    %c0_2 = arith.constant 0 : index
    %1 = vector.load %arg2[%c0_1, %c0_2] : memref<64x384xf32, #tpu.memory_space<vmem>>, vector<64x384xf32>
    %cst = arith.constant dense<0.000000e+00> : vector<32x384xf32>
    %2 = tpu.matmul %0, %1, %cst {dimension_numbers = #tpu.dot_dimension_numbers<[1], [0], [0], [1], [0, 0, 1, 1], [], []>} : vector<32x64xf32>, vector<64x384xf32>, vector<32x384xf32> -> vector<32x384xf32>
    %c0_3 = arith.constant 0 : index
    %c0_4 = arith.constant 0 : index
    %c0_5 = arith.constant 0 : index
    %3 = vector.load %arg4[%c0_3, %c0_4, %c0_5] : memref<3x32x32xf32, #tpu.memory_space<vmem>>, vector<1x32x32xf32>
    %4 = vector.shape_cast %3 : vector<1x32x32xf32> to vector<32x32xf32>
    %5 = vector.extract_strided_slice %2 {offsets = [0, 0], sizes = [32, 128], strides = [1, 1]} : vector<32x384xf32> to vector<32x128xf32>
    %cst_6 = arith.constant dense<0.000000e+00> : vector<32x128xf32>
    %6 = tpu.matmul %4, %5, %cst_6 {dimension_numbers = #tpu.dot_dimension_numbers<[1], [0], [0], [1], [0, 0, 1, 1], [], []>} : vector<32x32xf32>, vector<32x128xf32>, vector<32x128xf32> -> vector<32x128xf32>
    %c1 = arith.constant 1 : index
    %c0_7 = arith.constant 0 : index
    %c0_8 = arith.constant 0 : index
    %7 = vector.load %arg4[%c1, %c0_7, %c0_8] : memref<3x32x32xf32, #tpu.memory_space<vmem>>, vector<1x32x32xf32>
    %8 = vector.shape_cast %7 : vector<1x32x32xf32> to vector<32x32xf32>
    %9 = vector.extract_strided_slice %2 {offsets = [0, 128], sizes = [32, 128], strides = [1, 1]} : vector<32x384xf32> to vector<32x128xf32>
    %cst_9 = arith.constant dense<0.000000e+00> : vector<32x128xf32>
    %10 = tpu.matmul %8, %9, %cst_9 {dimension_numbers = #tpu.dot_dimension_numbers<[1], [0], [0], [1], [0, 0, 1, 1], [], []>} : vector<32x32xf32>, vector<32x128xf32>, vector<32x128xf32> -> vector<32x128xf32>
    %11 = arith.addf %6, %10 : vector<32x128xf32>
    %c2 = arith.constant 2 : index
    %c0_10 = arith.constant 0 : index
    %c0_11 = arith.constant 0 : index
    %12 = vector.load %arg4[%c2, %c0_10, %c0_11] : memref<3x32x32xf32, #tpu.memory_space<vmem>>, vector<1x32x32xf32>
    %13 = vector.shape_cast %12 : vector<1x32x32xf32> to vector<32x32xf32>
    %14 = vector.extract_strided_slice %2 {offsets = [0, 256], sizes = [32, 128], strides = [1, 1]} : vector<32x384xf32> to vector<32x128xf32>
    %cst_12 = arith.constant dense<0.000000e+00> : vector<32x128xf32>
    %15 = tpu.matmul %13, %14, %cst_12 {dimension_numbers = #tpu.dot_dimension_numbers<[1], [0], [0], [1], [0, 0, 1, 1], [], []>} : vector<32x32xf32>, vector<32x128xf32>, vector<32x128xf32> -> vector<32x128xf32>
    %16 = arith.addf %11, %15 : vector<32x128xf32>
    %cst_13 = arith.constant dense<0.000000e+00> : vector<128xf32>
    %17 = vector.multi_reduction <add>, %16, %cst_13 [0] : vector<32x128xf32> to vector<128xf32>
    %18 = vector.shape_cast %17 : vector<128xf32> to vector<1x128xf32>
    %19 = arith.mulf %16, %16 : vector<32x128xf32>
    %cst_14 = arith.constant dense<0.000000e+00> : vector<128xf32>
    %20 = vector.multi_reduction <add>, %19, %cst_14 [0] : vector<32x128xf32> to vector<128xf32>
    %21 = vector.shape_cast %20 : vector<128xf32> to vector<1x128xf32>
    %22 = tpu.concatenate %18, %21 in 0 : vector<1x128xf32>, vector<1x128xf32> -> vector<2x128xf32>
    %c0_15 = arith.constant 0 : index
    %c0_16 = arith.constant 0 : index
    %23 = vector.load %arg5[%c0_15, %c0_16] : memref<128x8xf32, #tpu.memory_space<vmem>>, vector<128x8xf32>
    %cst_17 = arith.constant dense<0.000000e+00> : vector<2x8xf32>
    %24 = tpu.matmul %22, %23, %cst_17 {dimension_numbers = #tpu.dot_dimension_numbers<[1], [0], [0], [1], [0, 0, 1, 1], [], []>} : vector<2x128xf32>, vector<128x8xf32>, vector<2x8xf32> -> vector<2x8xf32>
    %25 = vector.extract_strided_slice %24 {offsets = [0, 0], sizes = [1, 8], strides = [1, 1]} : vector<2x8xf32> to vector<1x8xf32>
    %cst_18 = arith.constant 0.001953125 : f32
    %26 = vector.broadcast %cst_18 : f32 to vector<1x8xf32>
    %27 = arith.mulf %25, %26 : vector<1x8xf32>
    %28 = vector.extract_strided_slice %24 {offsets = [1, 0], sizes = [1, 8], strides = [1, 1]} : vector<2x8xf32> to vector<1x8xf32>
    %cst_19 = arith.constant 0.001953125 : f32
    %29 = vector.broadcast %cst_19 : f32 to vector<1x8xf32>
    %30 = arith.mulf %28, %29 : vector<1x8xf32>
    %31 = arith.mulf %27, %27 : vector<1x8xf32>
    %32 = arith.subf %30, %31 : vector<1x8xf32>
    %cst_20 = arith.constant 0.000000e+00 : f32
    %33 = vector.broadcast %cst_20 : f32 to vector<1x8xf32>
    %34 = arith.maximumf %32, %33 : vector<1x8xf32>
    %c0_21 = arith.constant 0 : index
    %c0_22 = arith.constant 0 : index
    %35 = vector.load %arg9[%c0_21, %c0_22] : memref<1x8xf32, #tpu.memory_space<vmem>>, vector<1x8xf32>
    %cst_23 = arith.constant 9.99999974E-6 : f32
    %36 = vector.broadcast %cst_23 : f32 to vector<1x8xf32>
    %37 = arith.addf %34, %36 : vector<1x8xf32>
    %38 = math.rsqrt %37 : vector<1x8xf32>
    %39 = arith.mulf %35, %38 : vector<1x8xf32>
    %c0_24 = arith.constant 0 : index
    %c0_25 = arith.constant 0 : index
    %40 = vector.load %arg10[%c0_24, %c0_25] : memref<1x8xf32, #tpu.memory_space<vmem>>, vector<1x8xf32>
    %41 = arith.mulf %27, %39 : vector<1x8xf32>
    %42 = arith.subf %40, %41 : vector<1x8xf32>
    %43 = tpu.concatenate %39, %42 in 0 : vector<1x8xf32>, vector<1x8xf32> -> vector<2x8xf32>
    %c0_26 = arith.constant 0 : index
    %c0_27 = arith.constant 0 : index
    %44 = vector.load %arg6[%c0_26, %c0_27] : memref<8x128xf32, #tpu.memory_space<vmem>>, vector<8x128xf32>
    %cst_28 = arith.constant dense<0.000000e+00> : vector<2x128xf32>
    %45 = tpu.matmul %43, %44, %cst_28 {dimension_numbers = #tpu.dot_dimension_numbers<[1], [0], [0], [1], [0, 0, 1, 1], [], []>} : vector<2x8xf32>, vector<8x128xf32>, vector<2x128xf32> -> vector<2x128xf32>
    %46 = vector.extract_strided_slice %45 {offsets = [0, 0], sizes = [1, 128], strides = [1, 1]} : vector<2x128xf32> to vector<1x128xf32>
    %47 = vector.broadcast %46 : vector<1x128xf32> to vector<32x128xf32>
    %48 = arith.mulf %16, %47 : vector<32x128xf32>
    %49 = vector.extract_strided_slice %45 {offsets = [1, 0], sizes = [1, 128], strides = [1, 1]} : vector<2x128xf32> to vector<1x128xf32>
    %50 = vector.broadcast %49 : vector<1x128xf32> to vector<32x128xf32>
    %51 = arith.addf %48, %50 : vector<32x128xf32>
    %cst_29 = arith.constant 0.000000e+00 : f32
    %52 = vector.broadcast %cst_29 : f32 to vector<32x128xf32>
    %53 = arith.maximumf %51, %52 : vector<32x128xf32>
    %c0_30 = arith.constant 0 : index
    %c0_31 = arith.constant 0 : index
    %54 = vector.load %arg3[%c0_30, %c0_31] : memref<128x384xf32, #tpu.memory_space<vmem>>, vector<128x384xf32>
    %cst_32 = arith.constant dense<0.000000e+00> : vector<32x384xf32>
    %55 = tpu.matmul %53, %54, %cst_32 {dimension_numbers = #tpu.dot_dimension_numbers<[1], [0], [0], [1], [0, 0, 1, 1], [], []>} : vector<32x128xf32>, vector<128x384xf32>, vector<32x384xf32> -> vector<32x384xf32>
    %c0_33 = arith.constant 0 : index
    %c0_34 = arith.constant 0 : index
    %c0_35 = arith.constant 0 : index
    %56 = vector.load %arg4[%c0_33, %c0_34, %c0_35] : memref<3x32x32xf32, #tpu.memory_space<vmem>>, vector<1x32x32xf32>
    %57 = vector.shape_cast %56 : vector<1x32x32xf32> to vector<32x32xf32>
    %58 = vector.extract_strided_slice %55 {offsets = [0, 0], sizes = [32, 128], strides = [1, 1]} : vector<32x384xf32> to vector<32x128xf32>
    %cst_36 = arith.constant dense<0.000000e+00> : vector<32x128xf32>
    %59 = tpu.matmul %57, %58, %cst_36 {dimension_numbers = #tpu.dot_dimension_numbers<[1], [0], [0], [1], [0, 0, 1, 1], [], []>} : vector<32x32xf32>, vector<32x128xf32>, vector<32x128xf32> -> vector<32x128xf32>
    %c1_37 = arith.constant 1 : index
    %c0_38 = arith.constant 0 : index
    %c0_39 = arith.constant 0 : index
    %60 = vector.load %arg4[%c1_37, %c0_38, %c0_39] : memref<3x32x32xf32, #tpu.memory_space<vmem>>, vector<1x32x32xf32>
    %61 = vector.shape_cast %60 : vector<1x32x32xf32> to vector<32x32xf32>
    %62 = vector.extract_strided_slice %55 {offsets = [0, 128], sizes = [32, 128], strides = [1, 1]} : vector<32x384xf32> to vector<32x128xf32>
    %cst_40 = arith.constant dense<0.000000e+00> : vector<32x128xf32>
    %63 = tpu.matmul %61, %62, %cst_40 {dimension_numbers = #tpu.dot_dimension_numbers<[1], [0], [0], [1], [0, 0, 1, 1], [], []>} : vector<32x32xf32>, vector<32x128xf32>, vector<32x128xf32> -> vector<32x128xf32>
    %64 = arith.addf %59, %63 : vector<32x128xf32>
    %c2_41 = arith.constant 2 : index
    %c0_42 = arith.constant 0 : index
    %c0_43 = arith.constant 0 : index
    %65 = vector.load %arg4[%c2_41, %c0_42, %c0_43] : memref<3x32x32xf32, #tpu.memory_space<vmem>>, vector<1x32x32xf32>
    %66 = vector.shape_cast %65 : vector<1x32x32xf32> to vector<32x32xf32>
    %67 = vector.extract_strided_slice %55 {offsets = [0, 256], sizes = [32, 128], strides = [1, 1]} : vector<32x384xf32> to vector<32x128xf32>
    %cst_44 = arith.constant dense<0.000000e+00> : vector<32x128xf32>
    %68 = tpu.matmul %66, %67, %cst_44 {dimension_numbers = #tpu.dot_dimension_numbers<[1], [0], [0], [1], [0, 0, 1, 1], [], []>} : vector<32x32xf32>, vector<32x128xf32>, vector<32x128xf32> -> vector<32x128xf32>
    %69 = arith.addf %64, %68 : vector<32x128xf32>
    %cst_45 = arith.constant dense<0.000000e+00> : vector<128xf32>
    %70 = vector.multi_reduction <add>, %69, %cst_45 [0] : vector<32x128xf32> to vector<128xf32>
    %71 = vector.shape_cast %70 : vector<128xf32> to vector<1x128xf32>
    %72 = arith.mulf %69, %69 : vector<32x128xf32>
    %cst_46 = arith.constant dense<0.000000e+00> : vector<128xf32>
    %73 = vector.multi_reduction <add>, %72, %cst_46 [0] : vector<32x128xf32> to vector<128xf32>
    %74 = vector.shape_cast %73 : vector<128xf32> to vector<1x128xf32>
    %75 = tpu.concatenate %71, %74 in 0 : vector<1x128xf32>, vector<1x128xf32> -> vector<2x128xf32>
    %c0_47 = arith.constant 0 : index
    %c0_48 = arith.constant 0 : index
    %76 = vector.load %arg7[%c0_47, %c0_48] : memref<128x8xf32, #tpu.memory_space<vmem>>, vector<128x8xf32>
    %cst_49 = arith.constant dense<0.000000e+00> : vector<2x8xf32>
    %77 = tpu.matmul %75, %76, %cst_49 {dimension_numbers = #tpu.dot_dimension_numbers<[1], [0], [0], [1], [0, 0, 1, 1], [], []>} : vector<2x128xf32>, vector<128x8xf32>, vector<2x8xf32> -> vector<2x8xf32>
    %78 = vector.extract_strided_slice %77 {offsets = [0, 0], sizes = [1, 8], strides = [1, 1]} : vector<2x8xf32> to vector<1x8xf32>
    %cst_50 = arith.constant 0.001953125 : f32
    %79 = vector.broadcast %cst_50 : f32 to vector<1x8xf32>
    %80 = arith.mulf %78, %79 : vector<1x8xf32>
    %81 = vector.extract_strided_slice %77 {offsets = [1, 0], sizes = [1, 8], strides = [1, 1]} : vector<2x8xf32> to vector<1x8xf32>
    %cst_51 = arith.constant 0.001953125 : f32
    %82 = vector.broadcast %cst_51 : f32 to vector<1x8xf32>
    %83 = arith.mulf %81, %82 : vector<1x8xf32>
    %84 = arith.mulf %80, %80 : vector<1x8xf32>
    %85 = arith.subf %83, %84 : vector<1x8xf32>
    %cst_52 = arith.constant 0.000000e+00 : f32
    %86 = vector.broadcast %cst_52 : f32 to vector<1x8xf32>
    %87 = arith.maximumf %85, %86 : vector<1x8xf32>
    %c0_53 = arith.constant 0 : index
    %c0_54 = arith.constant 0 : index
    %88 = vector.load %arg11[%c0_53, %c0_54] : memref<1x8xf32, #tpu.memory_space<vmem>>, vector<1x8xf32>
    %cst_55 = arith.constant 9.99999974E-6 : f32
    %89 = vector.broadcast %cst_55 : f32 to vector<1x8xf32>
    %90 = arith.addf %87, %89 : vector<1x8xf32>
    %91 = math.rsqrt %90 : vector<1x8xf32>
    %92 = arith.mulf %88, %91 : vector<1x8xf32>
    %c0_56 = arith.constant 0 : index
    %c0_57 = arith.constant 0 : index
    %93 = vector.load %arg12[%c0_56, %c0_57] : memref<1x8xf32, #tpu.memory_space<vmem>>, vector<1x8xf32>
    %94 = arith.mulf %80, %92 : vector<1x8xf32>
    %95 = arith.subf %93, %94 : vector<1x8xf32>
    %96 = tpu.concatenate %92, %95 in 0 : vector<1x8xf32>, vector<1x8xf32> -> vector<2x8xf32>
    %c0_58 = arith.constant 0 : index
    %c0_59 = arith.constant 0 : index
    %97 = vector.load %arg8[%c0_58, %c0_59] : memref<8x128xf32, #tpu.memory_space<vmem>>, vector<8x128xf32>
    %cst_60 = arith.constant dense<0.000000e+00> : vector<2x128xf32>
    %98 = tpu.matmul %96, %97, %cst_60 {dimension_numbers = #tpu.dot_dimension_numbers<[1], [0], [0], [1], [0, 0, 1, 1], [], []>} : vector<2x8xf32>, vector<8x128xf32>, vector<2x128xf32> -> vector<2x128xf32>
    %99 = vector.extract_strided_slice %98 {offsets = [0, 0], sizes = [1, 128], strides = [1, 1]} : vector<2x128xf32> to vector<1x128xf32>
    %100 = vector.broadcast %99 : vector<1x128xf32> to vector<32x128xf32>
    %101 = arith.mulf %69, %100 : vector<32x128xf32>
    %102 = vector.extract_strided_slice %98 {offsets = [1, 0], sizes = [1, 128], strides = [1, 1]} : vector<2x128xf32> to vector<1x128xf32>
    %103 = vector.broadcast %102 : vector<1x128xf32> to vector<32x128xf32>
    %104 = arith.addf %101, %103 : vector<32x128xf32>
    %cst_61 = arith.constant 0.000000e+00 : f32
    %105 = vector.broadcast %cst_61 : f32 to vector<32x128xf32>
    %106 = arith.maximumf %104, %105 : vector<32x128xf32>
    %c0_62 = arith.constant 0 : index
    %c0_63 = arith.constant 0 : index
    %107 = vector.load %arg13[%c0_62, %c0_63] : memref<32x128xf32, #tpu.memory_space<vmem>>, vector<32x128xf32>
    tpu.vector_store %arg13[%c0_62, %c0_63], %106 {strides = array<i32>} : memref<32x128xf32, #tpu.memory_space<vmem>>, vector<32x128xf32>,
    return
  }
  func.func @transform_0(%arg0: i32) -> (i32, i32) {
    %c0_i32 = arith.constant 0 : i32
    %c0_i32_0 = arith.constant 0 : i32
    %c0_i32_1 = arith.constant 0 : i32
    return %c0_i32, %c0_i32_0 : i32, i32
  }
  func.func @transform_1(%arg0: i32) -> (i32, i32) {
    %c0_i32 = arith.constant 0 : i32
    %c0_i32_0 = arith.constant 0 : i32
    %c0_i32_1 = arith.constant 0 : i32
    return %c0_i32, %c0_i32_0 : i32, i32
  }
  func.func @transform_2(%arg0: i32) -> (i32, i32) {
    %c0_i32 = arith.constant 0 : i32
    %c0_i32_0 = arith.constant 0 : i32
    %c0_i32_1 = arith.constant 0 : i32
    return %c0_i32, %c0_i32_0 : i32, i32
  }
  func.func @transform_3(%arg0: i32) -> (i32, i32, i32) {
    %c0_i32 = arith.constant 0 : i32
    %c0_i32_0 = arith.constant 0 : i32
    %c0_i32_1 = arith.constant 0 : i32
    %c0_i32_2 = arith.constant 0 : i32
    return %c0_i32, %c0_i32_0, %c0_i32_1 : i32, i32, i32
  }
  func.func @transform_4(%arg0: i32) -> (i32, i32) {
    %c0_i32 = arith.constant 0 : i32
    %c0_i32_0 = arith.constant 0 : i32
    %c0_i32_1 = arith.constant 0 : i32
    return %c0_i32, %c0_i32_0 : i32, i32
  }
  func.func @transform_5(%arg0: i32) -> (i32, i32) {
    %c0_i32 = arith.constant 0 : i32
    %c0_i32_0 = arith.constant 0 : i32
    %c0_i32_1 = arith.constant 0 : i32
    return %c0_i32, %c0_i32_0 : i32, i32
  }
  func.func @transform_6(%arg0: i32) -> (i32, i32) {
    %c0_i32 = arith.constant 0 : i32
    %c0_i32_0 = arith.constant 0 : i32
    %c0_i32_1 = arith.constant 0 : i32
    return %c0_i32, %c0_i32_0 : i32, i32
  }
  func.func @transform_7(%arg0: i32) -> (i32, i32) {
    %c0_i32 = arith.constant 0 : i32
    %c0_i32_0 = arith.constant 0 : i32
    %c0_i32_1 = arith.constant 0 : i32
    return %c0_i32, %c0_i32_0 : i32, i32
  }
  func.func @transform_8(%arg0: i32) -> (i32, i32) {
    %c0_i32 = arith.constant 0 : i32
    %c0_i32_0 = arith.constant 0 : i32
    %c0_i32_1 = arith.constant 0 : i32
    return %c0_i32, %c0_i32_0 : i32, i32
  }
  func.func @transform_9(%arg0: i32) -> (i32, i32) {
    %c0_i32 = arith.constant 0 : i32
    %c0_i32_0 = arith.constant 0 : i32
    %c0_i32_1 = arith.constant 0 : i32
    return %c0_i32, %c0_i32_0 : i32, i32
  }
  func.func @transform_10(%arg0: i32) -> (i32, i32) {
    %c0_i32 = arith.constant 0 : i32
    %c0_i32_0 = arith.constant 0 : i32
    %c0_i32_1 = arith.constant 0 : i32
    return %c0_i32, %c0_i32_0 : i32, i32
  }
  func.func @transform_11(%arg0: i32) -> (i32, i32) {
    %c0_i32 = arith.constant 0 : i32
    %c0_i32_0 = arith.constant 0 : i32
    %c0_i32_1 = arith.constant 0 : i32
    return %c0_i32, %c0_i32_0 : i32, i32
  }
  func.func @transform_12(%arg0: i32) -> (i32, i32) {
    %c0_i32 = arith.constant 0 : i32
    %c0_i32_0 = arith.constant 0 : i32
    %c0_i32_1 = arith.constant 0 : i32
    return %c0_i32, %c0_i32_0 : i32, i32
  }
}

</mosaic_0001>

<bundles_post_ra>
// kernel: unet2d_block.1
= control target key start
LH: loop header
LB: loop body
LE: loop exit
PB: predicated region body
PF: predicated region fallthrough
CT: control target
= control target key end

     0   :  { %vm69_vm0 = vcmask 523264   ;;  %vm178_vm1 = vcmask 261120   ;;  %vm333_vm2 = vcmask 1040384   ;;  %vm404_vm6 = vcmask 64512   ;;  %s1452_s1 = inlined_call_operand.vmem [shape: f32[64,384], index: 1, kind: input, shape index: {}]   ;;  %s1453_s0 = inlined_call_operand.vmem [shape: f32[32,64], index: 0, kind: input, shape index: {}]   ;;  %s1454_s3 = inlined_call_operand.vmem [shape: f32[3,32,32], index: 3, kind: input, shape index: {}]   ;;  %s1455_s4 = inlined_call_operand.vmem [shape: f32[128,8], index: 4, kind: input, shape index: {}, may-alias: {4,6}]   ;;  %s1456_s5 = inlined_call_operand.vmem [shape: f32[8,128], index: 5, kind: input, shape index: {}, may-alias: {5,7}]   ;;  %s1457_s2 = inlined_call_operand.vmem [shape: f32[128,384], index: 2, kind: input, shape index: {}]   ;;  %s1458_s8 = inlined_call_operand.vmem [shape: f32[1,8], index: 8, kind: input, shape index: {}]   ;;  %s1459_s9 = inlined_call_operand.vmem [shape: f32[1,8], index: 9, kind: input, shape index: {}]   ;;  %s1460_s6 = inlined_call_operand.vmem [shape: f32[128,8], index: 6, kind: input, shape index: {}, may-alias: {4,6}]   ;;  %s1461_s7 = inlined_call_operand.vmem [shape: f32[8,128], index: 7, kind: input, shape index: {}, may-alias: {5,7}]   ;;  %s1462_s10 = inlined_call_operand.vmem [shape: f32[1,8], index: 10, kind: input, shape index: {}]   ;;  %s1463_s11 = inlined_call_operand.vmem [shape: f32[1,8], index: 11, kind: input, shape index: {}]   ;;  %s1464_s12 = inlined_call_operand.vmem [shape: f32[32,128], index: 12, kind: output, shape index: {}]  }
   0x1   :  { %v67_v0 = vld [vmem:[%s1452_s1 + $0xb0] sm:$0xff]  ;;  %v68_v1 = vld [vmem:[%s1452_s1 + $0xb8] sm:$0xff]  ;;  %v65_v3 = vld [vmem:[%s1452_s1 + $0xa0] sm:$0xff] }
   0x2   :  { %v64_v2 = vld [vmem:[%s1452_s1 + $0x98] sm:$0xff]  ;;  %119 = vmatpush.msra.mxu1 %v67_v0  ;;  %148 = vmatpush.msra.mxu2 %v68_v1  ;;  %v61_v4 = vld [vmem:[%s1452_s1 + $0x80] sm:$0xff]  ;;  %v62_v5 = vld [vmem:[%s1452_s1 + $0x88] sm:$0xff] }
   0x3   :  { %v66_v6 = vld [vmem:[%s1452_s1 + $0xa8] sm:$0xff]  ;;  %v63_v7 = vld [vmem:[%s1452_s1 + $0x90] sm:$0xff]  ;;  %v60_v10 = vld [vmem:[%s1452_s1 + $0x78] sm:$0xff] }
   0x4   :  { %120 = vmatpush.msra.mxu1 %v64_v2  ;;  %149 = vmatpush.msra.mxu2 %v65_v3  ;;  %v58_v8 = vld [vmem:[%s1452_s1 + $0x68] sm:$0xff]  ;;  %v59_v9 = vld [vmem:[%s1452_s1 + $0x70] sm:$0xff]  ;;  %v56_v12 = vld [vmem:[%s1452_s1 + $0x58] sm:$0xff] }
   0x5   :  { %90 = vmatpush.msra.mxu0 %v66_v6  ;;  %v55_v11 = vld [vmem:[%s1452_s1 + $0x50] sm:$0xff]  ;;  %v57_v13 = vld [vmem:[%s1452_s1 + $0x60] sm:$0xff]  ;;  %v52_v14 = vld [vmem:[%s1452_s1 + $0x38] sm:$0xff] }
   0x6   :  { %121 = vmatpush.msra.mxu1 %v61_v4  ;;  %150 = vmatpush.msra.mxu2 %v62_v5  ;;  %v53_v15 = vld [vmem:[%s1452_s1 + $0x40] sm:$0xff]  ;;  %v54_v16 = vld [vmem:[%s1452_s1 + $0x48] sm:$0xff]  ;;  %v51_v19 = vld [vmem:[%s1452_s1 + $0x30] sm:$0xff] }
   0x7   :  { %91 = vmatpush.msra.mxu0 %v63_v7  ;;  %v49_v17 = vld [vmem:[%s1452_s1 + $0x20] sm:$0xff]  ;;  %v50_v18 = vld [vmem:[%s1452_s1 + $0x28] sm:$0xff]  ;;  %v47_v21 = vld [vmem:[%s1452_s1 + $0x10] sm:$0xff] }
   0x8   :  { %122 = vmatpush.msra.mxu1 %v58_v8  ;;  %151 = vmatpush.msra.mxu2 %v59_v9  ;;  %v46_v20 = vld [vmem:[%s1452_s1 + $0x8] sm:$0xff]  ;;  %v41_v22 = vld [vmem:[%s1453_s0] sm:$0xff]  ;;  %v48_v23 = vld [vmem:[%s1452_s1 + $0x18] sm:$0xff] }
   0x9   :  { %92 = vmatpush.msra.mxu0 %v60_v10  ;;  %v45_v24 = vld [vmem:[%s1452_s1] sm:$0xff]  ;;  %v42_v25 = vld [vmem:[%s1453_s0 + $0x8] sm:$0xff]  ;;  %v43_v26 = vld [vmem:[%s1453_s0 + $0x10] sm:$0xff] }
   0xa   :  { %123 = vmatpush.msra.mxu1 %v55_v11  ;;  %152 = vmatpush.msra.mxu2 %v56_v12  ;;  %v44_v27 = vld [vmem:[%s1453_s0 + $0x18] sm:$0xff]  ;;  %v1023_v38 = vld [vmem:[%s1454_s3 + $0x28] sm:$0xff]  ;;  %v1028_v41 = vld [vmem:[%s1454_s3 + $0x20] sm:$0xff] }
   0xb   :  { %93 = vmatpush.msra.mxu0 %v57_v13  ;;  %v1037_v42 = vld [vmem:[%s1454_s3 + $0x30] sm:$0xff]  ;;  %v1042_v43 = vld [vmem:[%s1454_s3 + $0x40] sm:$0xff]  ;;  %v1051_v44 = vld [vmem:[%s1454_s3 + $0x38] sm:$0xff] }
   0xc   :  { %124 = vmatpush.msra.mxu1 %v52_v14  ;;  %153 = vmatpush.msra.mxu2 %v53_v15  ;;  %v1056_v45 = vld [vmem:[%s1454_s3 + $0x48] sm:$0xff]  ;;  %v1065_v46 = vld [vmem:[%s1454_s3] sm:$0xff]  ;;  %v1070_v47 = vld [vmem:[%s1454_s3 + $0x50] sm:$0xff] }
   0xd   :  { %94 = vmatpush.msra.mxu0 %v54_v16  ;;  %v1079_v48 = vld [vmem:[%s1454_s3 + $0x8] sm:$0xff]  ;;  %v1084_v49 = vld [vmem:[%s1454_s3 + $0x58] sm:$0xff]  ;;  %v1093_v50 = vld [vmem:[%s1454_s3 + $0x10] sm:$0xff] }
   0xe   :  { %125 = vmatpush.msra.mxu1 %v49_v17  ;;  %154 = vmatpush.msra.mxu2 %v50_v18  ;;  %v1100_v51 = vld [vmem:[%s1454_s3 + $0x18] sm:$0xff]  ;;  %v349_v56 = vld [vmem:[%s1455_s4 + $0x70] sm:$0xff]  ;;  %v348_v57 = vld [vmem:[%s1455_s4 + $0x68] sm:$0xff] }
   0xf   :  { %95 = vmatpush.msra.mxu0 %v51_v19  ;;  %v350_v53 = vld [vmem:[%s1455_s4 + $0x78] sm:$0xff]  ;;  %v347_v58 = vld [vmem:[%s1455_s4 + $0x60] sm:$0xff]  ;;  %v345_v61 = vld [vmem:[%s1455_s4 + $0x50] sm:$0xff] }
  0x10   :  { %126 = vmatpush.msra.mxu1 %v46_v20  ;;  %155 = vmatpush.msra.mxu2 %v47_v21  ;;  %v346_v59 = vld [vmem:[%s1455_s4 + $0x58] sm:$0xff]  ;;  %v344_v63 = vld [vmem:[%s1455_s4 + $0x48] sm:$0xff]  ;;  %v343_v0 = vld [vmem:[%s1455_s4 + $0x40] sm:$0xff] }
  0x11   :  { %809 = vmatmul.msk.f32.vlgmr.msra.gmra.mxu1 %vm69_vm0, %v41_v22  ;;  %813 = vmatmul.msk.f32.vlgmr.msra.gmra.mxu2 %vm69_vm0, %v41_v22  ;;  %v342_v1 = vld [vmem:[%s1455_s4 + $0x38] sm:$0xff]  ;;  %v341_v3 = vld [vmem:[%s1455_s4 + $0x30] sm:$0xff]  ;;  %v340_v4 = vld [vmem:[%s1455_s4 + $0x28] sm:$0xff] }
  0x12   :  { %96 = vmatpush.msra.mxu0 %v48_v23  ;;  %351 = vmatpush.msrb.mxu1 %v350_v53  ;;  %v339_v5 = vld [vmem:[%s1455_s4 + $0x20] sm:$0xff]  ;;  %v338_v7 = vld [vmem:[%s1455_s4 + $0x18] sm:$0xff]  ;;  %v337_v8 = vld [vmem:[%s1455_s4 + $0x10] sm:$0xff] }
  0x13   :  { %v336_v10 = vld [vmem:[%s1455_s4 + $0x8] sm:$0xff]  ;;  %v335_v11 = vld [vmem:[%s1455_s4] sm:$0xff] }
  0x14   :  { %97 = vmatpush.msra.mxu0 %v45_v24  ;;  %352 = vmatpush.msrb.mxu1 %v349_v56 }
  0x15   :  { %805 = vmatmul.msk.f32.vlgmr.msra.gmra.mxu0 %vm69_vm0, %v41_v22 }
  0x16   :  { %353 = vmatpush.msrb.mxu1 %v348_v57 }
  0x18   :  { %354 = vmatpush.msrb.mxu1 %v347_v58 }
  0x19   :  { %810 = vmatmul.msk.f32.gmra.mxu1 %vm69_vm0, %v42_v25  ;;  %814 = vmatmul.msk.f32.gmra.mxu2 %vm69_vm0, %v42_v25 }
  0x1a   :  { %355 = vmatpush.msrb.mxu1 %v346_v59 }
  0x1c   :  { %356 = vmatpush.msrb.mxu1 %v345_v61 }
  0x1d   :  { %806 = vmatmul.msk.f32.gmra.mxu0 %vm69_vm0, %v42_v25 }
  0x1e   :  { %357 = vmatpush.msrb.mxu1 %v344_v63 }
  0x20   :  { %358 = vmatpush.msrb.mxu1 %v343_v0 }
  0x21   :  { %811 = vmatmul.msk.f32.gmra.mxu1 %vm69_vm0, %v43_v26  ;;  %815 = vmatmul.msk.f32.gmra.mxu2 %vm69_vm0, %v43_v26 }
  0x22   :  { %359 = vmatpush.msrb.mxu1 %v342_v1 }
  0x24   :  { %360 = vmatpush.msrb.mxu1 %v341_v3  ;;  %v487_v3 = vld [vmem:[%s1457_s2 + $0x168] sm:$0xff] }
  0x25   :  { %807 = vmatmul.msk.f32.gmra.mxu0 %vm69_vm0, %v43_v26 }
  0x26   :  { %361 = vmatpush.msrb.mxu1 %v340_v4  ;;  %v488_v4 = vld [vmem:[%s1457_s2 + $0x170] sm:$0xff] }
  0x28   :  { %362 = vmatpush.msrb.mxu1 %v339_v5  ;;  %v489_v5 = vld [vmem:[%s1457_s2 + $0x178] sm:$0xff] }
  0x29   :  { %812 = vmatmul.msk.f32.gmra.mxu1 %vm69_vm0, %v44_v27  ;;  %816 = vmatmul.msk.f32.gmra.mxu2 %vm69_vm0, %v44_v27 }
  0x2a   :  { %363 = vmatpush.msrb.mxu1 %v338_v7  ;;  %v485_v7 = vld [vmem:[%s1457_s2 + $0x158] sm:$0xff] }
  0x2c   :  { %364 = vmatpush.msrb.mxu1 %v337_v8  ;;  %v486_v8 = vld [vmem:[%s1457_s2 + $0x160] sm:$0xff] }
  0x2d   :  { %808 = vmatmul.msk.f32.gmra.mxu0 %vm69_vm0, %v44_v27 }
  0x2e   :  { %365 = vmatpush.msrb.mxu1 %v336_v10  ;;  %v482_v10 = vld [vmem:[%s1457_s2 + $0x140] sm:$0xff] }
  0x30   :  { %366 = vmatpush.msrb.mxu1 %v335_v11 }
  0x32   :  { %548 = vmatpush.msra.mxu1 %v489_v5  ;;  %v455_v5 = vld [vmem:[%s1457_s2 + $0x68] sm:$0xff] }
  0x34   :  { %549 = vmatpush.msra.mxu1 %v486_v8  ;;  %v453_v8 = vld [vmem:[%s1457_s2 + $0x58] sm:$0xff] }
  0x8e   :  { %v128_v28 = vpop.f32.mrf.mxu1 }
  0x92   :  { %v99_v29 = vpop.f32.mrf.mxu0 }
  0x94   :  { %v157_v30 = vpop.f32.mrf.mxu2 }
  0x96   :  { %v131_v31 = vpop.f32.mrf.mxu1 }
  0x9a   :  { %v102_v32 = vpop.f32.mrf.mxu0 }
  0x9c   :  { %v160_v33 = vpop.f32.mrf.mxu2 }
  0x9e   :  { %v134_v34 = vpop.f32.mrf.mxu1 }
  0xa2   :  { %v105_v35 = vpop.f32.mrf.mxu0 }
  0xa4   :  { %v163_v36 = vpop.f32.mrf.mxu2 }
  0xa6   :  { %v137_v37 = vpop.f32.mrf.mxu1 }
  0xa7   :  { %203 = vmatpush.msrb.mxu0 %v137_v37  ;;  %851 = vmatpush.msra.mxu3 %v137_v37 }
  0xa9   :  { %204 = vmatpush.msrb.mxu0 %v134_v34  ;;  %852 = vmatpush.msra.mxu3 %v134_v34 }
  0xaa   :  { %v108_v39 = vpop.f32.mrf.mxu0 }
  0xab   :  { %205 = vmatpush.msrb.mxu0 %v131_v31  ;;  %853 = vmatpush.msra.mxu3 %v131_v31 }
  0xac   :  { %v166_v40 = vpop.f32.mrf.mxu2 }
  0xad   :  { %206 = vmatpush.msrb.mxu0 %v128_v28  ;;  %854 = vmatpush.msra.mxu3 %v128_v28 }
  0xae   :  { %822 = vmatmul.msk.f32.vlgmr.msra.gmra.mxu3 %vm178_vm1, %v1023_v38  ;;  %821 = vmatmul.msk.f32.vlgmr.msrb.gmra.mxu0 %vm178_vm1, %v1028_v41 }
  0xaf   :  { %290 = vmatpush.msra.mxu0 %v166_v40  ;;  %244 = vmatpush.msrb.mxu3 %v108_v39 }
  0xb1   :  { %291 = vmatpush.msra.mxu0 %v163_v36  ;;  %245 = vmatpush.msrb.mxu3 %v105_v35 }
  0xb3   :  { %292 = vmatpush.msra.mxu0 %v160_v33  ;;  %246 = vmatpush.msrb.mxu3 %v102_v32 }
  0xb5   :  { %293 = vmatpush.msra.mxu0 %v157_v30  ;;  %247 = vmatpush.msrb.mxu3 %v99_v29 }
  0xb6   :  { %823 = vmatmul.msk.f32.gmra.mxu3 %vm178_vm1, %v1037_v42  ;;  %833 = vmatmul.msk.f32.vlgmr.msra.gmra.mxu0 %vm178_vm1, %v1042_v43 }
  0xb7   :  { %490 = vmatpush.msra.mxu3 %v487_v3  ;;  %519 = vmatpush.msrb.mxu0 %v488_v4  ;;  %v454_v4 = vld [vmem:[%s1457_s2 + $0x60] sm:$0xff] }
  0xb9   :  { %520 = vmatpush.msrb.mxu0 %v485_v7  ;;  %v452_v7 = vld [vmem:[%s1457_s2 + $0x50] sm:$0xff] }
  0xbb   :  { %521 = vmatpush.msrb.mxu0 %v482_v10  ;;  %v449_v10 = vld [vmem:[%s1457_s2 + $0x38] sm:$0xff] }
  0xbe   :  { %824 = vmatmul.msk.f32.gmra.mxu3 %vm178_vm1, %v1051_v44  ;;  %834 = vmatmul.msk.f32.gmra.mxu0 %vm178_vm1, %v1056_v45 }
  0xc6   :  { %825 = vmatmul.msk.f32.vlgmr.msrb.gmra.mxu3 %vm178_vm1, %v1065_v46  ;;  %835 = vmatmul.msk.f32.gmra.mxu0 %vm178_vm1, %v1070_v47 }
  0xce   :  { %826 = vmatmul.msk.f32.gmra.mxu3 %vm178_vm1, %v1079_v48  ;;  %836 = vmatmul.msk.f32.gmra.mxu0 %vm178_vm1, %v1084_v49 }
  0xd6   :  { %827 = vmatmul.msk.f32.gmra.mxu3 %vm178_vm1, %v1093_v50 }
  0xde   :  { %828 = vmatmul.msk.f32.gmra.mxu3 %vm178_vm1, %v1100_v51 }
 0x12b   :  { %v208_v55 = vpop.f32.mrf.mxu0 }
 0x131   :  { %v211_v52 = vpop.f32.mrf.mxu3 }
 0x133   :  { %v295_v62 = vpop.f32.mrf.mxu0 }
 0x139   :  { %v214_v54 = vpop.f32.mrf.mxu3 }
 0x13b   :  { %v298_v6 = vpop.f32.mrf.mxu0 }
 0x141   :  { %v217_v60 = vpop.f32.mrf.mxu3 }
 0x143   :  { %v301_v12 = vpop.f32.mrf.mxu0 }
 0x149   :  { %v249_v2 = vpop.f32.mrf.mxu3 }
 0x14a   :  { %v250_v15 = vadd.f32 %v249_v2, %v208_v55  ;;  %v403_v2 = vld [vmem:[%s1456_s5] sm:$0xff] }
 0x14b   :  { %v304_v22 = vpop.f32.mrf.mxu0  ;;  %423 = vmatpush.msrb.mxu2 %v403_v2 }
 0x14c   :  { %v1154_v18 = vadd.f32 %v295_v62, %v250_v15  ;;  %v479_v15 = vld [vmem:[%s1457_s2 + $0x128] sm:$0xff] }
 0x14d   :  { %522 = vmatpush.msrb.mxu0 %v479_v15  ;;  %v442_v15 = vld [vmem:[%s1457_s2] sm:$0xff] }
 0x14e   :  { %v320_v23 = vmul.f32 %v1154_v18, %v1154_v18 }
 0x151   :  { %v252_v9 = vpop.f32.mrf.mxu3 }
 0x152   :  { %v253_v13 = vadd.f32 %v252_v9, %v211_v52  ;;  %v481_v9 = vld [vmem:[%s1457_s2 + $0x138] sm:$0xff] }
 0x154   :  { %v1152_v17 = vadd.f32 %v298_v6, %v253_v13  ;;  %v484_v6 = vld [vmem:[%s1457_s2 + $0x150] sm:$0xff] }
 0x155   :  { %491 = vmatpush.msra.mxu3 %v484_v6  ;;  %v456_v6 = vld [vmem:[%s1457_s2 + $0x70] sm:$0xff] }
 0x156   :  { %v321_v20 = vmul.f32 %v1152_v17, %v1152_v17  ;;  %v311_v24 = vadd.f32 %v1152_v17, %v1154_v18 }
 0x157   :  { %492 = vmatpush.msra.mxu3 %v481_v9  ;;  %v448_v9 = vld [vmem:[%s1457_s2 + $0x30] sm:$0xff] }
 0x158   :  { %v324_v27 = vadd.f32 %v321_v20, %v320_v23  ;;  %v477_v23 = vld [vmem:[%s1457_s2 + $0x118] sm:$0xff] }
 0x159   :  { %v255_v14 = vpop.f32.mrf.mxu3 }
 0x15a   :  { %v256_v16 = vadd.f32 %v255_v14, %v214_v54  ;;  %v478_v14 = vld [vmem:[%s1457_s2 + $0x120] sm:$0xff] }
 0x15b   :  { %493 = vmatpush.msra.mxu3 %v478_v14  ;;  %v447_v14 = vld [vmem:[%s1457_s2 + $0x28] sm:$0xff] }
 0x15c   :  { %v1156_v19 = vadd.f32 %v301_v12, %v256_v16  ;;  %v483_v12 = vld [vmem:[%s1457_s2 + $0x148] sm:$0xff]  ;;  %v480_v16 = vld [vmem:[%s1457_s2 + $0x130] sm:$0xff] }
 0x15d   :  { %550 = vmatpush.msra.mxu1 %v483_v12  ;;  %v445_v12 = vld [vmem:[%s1457_s2 + $0x18] sm:$0xff] }
 0x15e   :  { %v322_v25 = vmul.f32 %v1156_v19, %v1156_v19  ;;  %v312_v28 = vadd.f32 %v311_v24, %v1156_v19 }
 0x15f   :  { %551 = vmatpush.msra.mxu1 %v480_v16  ;;  %v443_v16 = vld [vmem:[%s1457_s2 + $0x8] sm:$0xff] }
 0x160   :  { %v325_v30 = vadd.f32 %v324_v27, %v322_v25  ;;  %v472_v25 = vld [vmem:[%s1457_s2 + $0xf0] sm:$0xff]  ;;  %v474_v27 = vld [vmem:[%s1457_s2 + $0x100] sm:$0xff] }
 0x161   :  { %v258_v21 = vpop.f32.mrf.mxu3  ;;  %552 = vmatpush.msra.mxu1 %v477_v23 }
 0x162   :  { %v259_v26 = vadd.f32 %v258_v21, %v217_v60  ;;  %v475_v21 = vld [vmem:[%s1457_s2 + $0x108] sm:$0xff] }
 0x163   :  { %494 = vmatpush.msra.mxu3 %v475_v21  ;;  %553 = vmatpush.msra.mxu1 %v474_v27 }
 0x164   :  { %v1167_v29 = vadd.f32 %v304_v22, %v259_v26  ;;  %v476_v22 = vld [vmem:[%s1457_s2 + $0x110] sm:$0xff]  ;;  %v473_v26 = vld [vmem:[%s1457_s2 + $0xf8] sm:$0xff] }
 0x165   :  { %523 = vmatpush.msrb.mxu0 %v476_v22  ;;  %495 = vmatpush.msra.mxu3 %v472_v25 }
 0x166   :  { %v313_v31 = vadd.f32 %v312_v28, %v1167_v29  ;;  %v323_v32 = vmul.f32 %v1167_v29, %v1167_v29 }
 0x167   :  { %524 = vmatpush.msrb.mxu0 %v473_v26 }
 0x168   :  { %v314_v33 = vrot.slane %v313_v31, 4  ;;  %v326_v34 = vadd.f32 %v325_v30, %v323_v32  ;;  %v469_v30 = vld [vmem:[%s1457_s2 + $0xd8] sm:$0xff]  ;;  %v471_v32 = vld [vmem:[%s1457_s2 + $0xe8] sm:$0xff] }
 0x169   :  { %496 = vmatpush.msra.mxu3 %v469_v30  ;;  %554 = vmatpush.msra.mxu1 %v471_v32 }
 0x16a   :  { %v315_v35 = vadd.f32 %v314_v33, %v313_v31  ;;  %v327_v36 = vrot.slane %v326_v34, 4  ;;  %v470_v31 = vld [vmem:[%s1457_s2 + $0xe0] sm:$0xff] }
 0x16b   :  { %525 = vmatpush.msrb.mxu0 %v470_v31 }
 0x16c   :  { %v316_v37 = vrot.slane %v315_v35, 2  ;;  %v328_v39 = vadd.f32 %v327_v36, %v326_v34  ;;  %v466_v34 = vld [vmem:[%s1457_s2 + $0xc0] sm:$0xff]  ;;  %v468_v36 = vld [vmem:[%s1457_s2 + $0xd0] sm:$0xff] }
 0x16d   :  { %497 = vmatpush.msra.mxu3 %v466_v34  ;;  %555 = vmatpush.msra.mxu1 %v468_v36 }
 0x16e   :  { %v317_v40 = vadd.f32 %v316_v37, %v315_v35  ;;  %v329_v52 = vrot.slane %v328_v39, 2  ;;  %v467_v35 = vld [vmem:[%s1457_s2 + $0xc8] sm:$0xff] }
 0x16f   :  { %526 = vmatpush.msrb.mxu0 %v467_v35 }
 0x170   :  { %v318_v53 = vrot.slane %v317_v40, 1  ;;  %v330_v54 = vadd.f32 %v329_v52, %v328_v39  ;;  %v463_v39 = vld [vmem:[%s1457_s2 + $0xa8] sm:$0xff]  ;;  %v465_v52 = vld [vmem:[%s1457_s2 + $0xb8] sm:$0xff] }
 0x171   :  { %498 = vmatpush.msra.mxu3 %v463_v39  ;;  %556 = vmatpush.msra.mxu1 %v465_v52 }
 0x172   :  { %v331_v55 = vrot.slane %v330_v54, 1  ;;  %v319_v56 = vadd.f32 %v318_v53, %v317_v40  ;;  %v464_v40 = vld [vmem:[%s1457_s2 + $0xb0] sm:$0xff] }
 0x173   :  { %v460_v53 = vld [vmem:[%s1457_s2 + $0x90] sm:$0xff]  ;;  %527 = vmatpush.msrb.mxu0 %v464_v40 }
 0x174   :  { %v332_v57 = vadd.f32 %v331_v55, %v330_v54  ;;  %v461_v54 = vld [vmem:[%s1457_s2 + $0x98] sm:$0xff]  ;;  %v462_v55 = vld [vmem:[%s1457_s2 + $0xa0] sm:$0xff]  ;;  %499 = vmatpush.msra.mxu3 %v460_v53 }
 0x175   :  { %528 = vmatpush.msrb.mxu0 %v461_v54  ;;  %557 = vmatpush.msra.mxu1 %v462_v55 }
 0x176   :  { %v334_v58 = vsel %vm333_vm2, %v319_v56, %v332_v57  ;;  %v457_v56 = vld [vmem:[%s1457_s2 + $0x78] sm:$0xff]  ;;  %v458_v57 = vld [vmem:[%s1457_s2 + $0x80] sm:$0xff] }
 0x177   :  { %367 = vmatmul.f32.vlgmr.msrb.gmra.mxu1 %v334_v58  ;;  %v459_v58 = vld [vmem:[%s1457_s2 + $0x88] sm:$0xff]  ;;  %500 = vmatpush.msra.mxu3 %v457_v56 }
 0x178   :  { %529 = vmatpush.msrb.mxu0 %v458_v57  ;;  %558 = vmatpush.msra.mxu1 %v459_v58  ;;  %v699_v57 = vld [vmem:[%s1460_s6 + $0x40] sm:$0xff]  ;;  %v698_v58 = vld [vmem:[%s1460_s6 + $0x38] sm:$0xff] }
 0x179   :  { %501 = vmatpush.msra.mxu3 %v454_v4  ;;  %v692_v4 = vld [vmem:[%s1460_s6 + $0x8] sm:$0xff] }
 0x17a   :  { %530 = vmatpush.msrb.mxu0 %v455_v5  ;;  %559 = vmatpush.msra.mxu1 %v456_v6  ;;  %v691_v5 = vld [vmem:[%s1460_s6] sm:$0xff] }
 0x17c   :  { %531 = vmatpush.msrb.mxu0 %v452_v7  ;;  %560 = vmatpush.msra.mxu1 %v453_v8 }
 0x17e   :  { %532 = vmatpush.msrb.mxu0 %v449_v10 }
 0x1f4   :  { %v368_v59 = vpop.f32.mrf.mxu1 }
 0x1f5   :  { %v1173_v60 = vmul.f32 0.001953125, %v368_v59  ;;  %v378_v59 = vld [vmem:[%s1458_s8] sm:$0x1] }
 0x1f7   :  { %v372_v61 = vmul.f32 %v1173_v60, %v1173_v60 }
 0x1f9   :  { %v374_v62 = vrot.slane %v372_v61, 7 }
 0x1fb   :  { %v376_v63 = vsub.f32 %v1173_v60, %v374_v62 }
 0x1fd   :  { %v377_v0 = vmax.f32 %v376_v63, 0.0  ;;  %v396_v63 = vld [vmem:[%s1459_s9] sm:$0x1] }
 0x1ff   :  { %v379_v1 = vadd.f32 1e-05, %v377_v0 }
 0x201   :  { %855 = vrsqrt.f32 %v379_v1  ;;  %vm386_vm4 = vweird.f32 %v379_v1 }
 0x207   :  { %v856_v11 = vpop.eup %855 }
 0x208   :  { %v381_v13 = vmul.f32 %v856_v11, %v379_v1  ;;  %vm387_vm3 = vweird.f32 %v856_v11 }
 0x209   :  { %vm388_vm5 = vmor %vm386_vm4, %vm387_vm3 }
 0x20a   :  { %v382_v20 = vmul.f32 %v856_v11, %v381_v13  ;;  %v446_v13 = vld [vmem:[%s1457_s2 + $0x20] sm:$0xff] }
 0x20b   :  { %533 = vmatpush.msrb.mxu0 %v446_v13 }
 0x20c   :  { %v383_v24 = vmul.f32 0.5, %v382_v20  ;;  %v444_v20 = vld [vmem:[%s1457_s2 + $0x10] sm:$0xff] }
 0x20d   :  { %534 = vmatpush.msrb.mxu0 %v443_v16 }
 0x20e   :  { %v384_v28 = vsub.f32 1.5, %v383_v24 }
 0x210   :  { %v385_v33 = vmul.f32 %v856_v11, %v384_v28 }
 0x212   :  { %v389_v37 = vsel %vm388_vm5, %v856_v11, %v385_v33  ;;  %v450_v11 = vld [vmem:[%s1457_s2 + $0x40] sm:$0xff] }
 0x213   :  { %391 = vst [vmem:[#allocation1] sm:$0xff] %v389_v37  ;;  %561 = vmatpush.msra.mxu1 %v450_v11 }
 0x215   :  { %562 = vmatpush.msra.mxu1 %v447_v14 }
 0x217   :  { %563 = vmatpush.msra.mxu1 %v444_v20 }
 0x21a   :  { %v393_v61 = vld [vmem:[#allocation1 + $0x1] ss:$9 sm:$0xff] }
 0x21b   :  { %v395_v62 = vmul.f32 %v393_v61, %v378_v59  ;;  %v697_v61 = vld [vmem:[%s1460_s6 + $0x30] sm:$0xff] }
 0x21d   :  { %v397_v0 = vmul.f32 %v395_v62, %v1173_v60  ;;  %v451_v60 = vld [vmem:[%s1457_s2 + $0x48] sm:$0xff] }
 0x21e   :  { %502 = vmatpush.msra.mxu3 %v451_v60 }
 0x21f   :  { %v398_v1 = vsub.f32 %v396_v63, %v397_v0  ;;  %v695_v0 = vld [vmem:[%s1460_s6 + $0x20] sm:$0xff] }
 0x220   :  { %503 = vmatpush.msra.mxu3 %v448_v9 }
 0x221   :  { %v400_v2 = vperm.slane %v398_v1, 0  ;;  %v694_v1 = vld [vmem:[%s1460_s6 + $0x18] sm:$0xff] }
 0x222   :  { %504 = vmatpush.msra.mxu3 %v445_v12 }
 0x223   :  { %v402_v3 = vsel %vm333_vm2, %v395_v62, %v400_v2  ;;  %v696_v62 = vld [vmem:[%s1460_s6 + $0x28] sm:$0xff]  ;;  %v693_v2 = vld [vmem:[%s1460_s6 + $0x10] sm:$0xff] }
 0x224   :  { %837 = vmatmul.msk.f32.vlgmr.msrb.gmra.mxu2 %vm404_vm6, %v402_v3  ;;  %505 = vmatpush.msra.mxu3 %v442_v15 }
 0x2a7   :  { %v425_v21 = vpop.f32.mrf.mxu2 }
 0x2a8   :  { %v428_v22 = vperm.slane %v425_v21, 0  ;;  %v433_v24 = vperm.slane %v425_v21, 1 }
 0x2aa   :  { %v429_v23 = vmul.f32 %v428_v22, %v1154_v18  ;;  %v430_v27 = vmul.f32 %v428_v22, %v1152_v17  ;;  %v431_v31 = vmul.f32 %v428_v22, %v1156_v19  ;;  %v432_v34 = vmul.f32 %v428_v22, %v1167_v29 }
 0x2ac   :  { %v434_v25 = vadd.f32 %v433_v24, %v429_v23  ;;  %v435_v28 = vadd.f32 %v433_v24, %v430_v27  ;;  %v436_v32 = vadd.f32 %v433_v24, %v431_v31  ;;  %v437_v18 = vadd.f32 %v433_v24, %v432_v34 }
 0x2ae   :  { %v438_v26 = vmax.f32 %v434_v25, 0.0  ;;  %v439_v30 = vmax.f32 %v435_v28, 0.0  ;;  %v440_v33 = vmax.f32 %v436_v32, 0.0  ;;  %v441_v35 = vmax.f32 %v437_v18, 0.0 }
 0x2b0   :  { %506 = vmatmul.f32.vlgmr.msra.gmra.mxu3 %v438_v26  ;;  %535 = vmatmul.f32.vlgmr.msrb.gmra.mxu0 %v438_v26 }
 0x2b1   :  { %564 = vmatmul.f32.vlgmr.msra.gmra.mxu1 %v438_v26 }
 0x2b8   :  { %509 = vmatmul.f32.gmra.mxu3 %v439_v30  ;;  %538 = vmatmul.f32.gmra.mxu0 %v439_v30 }
 0x2b9   :  { %567 = vmatmul.f32.gmra.mxu1 %v439_v30 }
 0x2c0   :  { %512 = vmatmul.f32.gmra.mxu3 %v440_v33  ;;  %541 = vmatmul.f32.gmra.mxu0 %v440_v33 }
 0x2c1   :  { %570 = vmatmul.f32.gmra.mxu1 %v440_v33 }
 0x2c8   :  { %515 = vmatmul.f32.gmra.mxu3 %v441_v35  ;;  %544 = vmatmul.f32.gmra.mxu0 %v441_v35 }
 0x2c9   :  { %573 = vmatmul.f32.gmra.mxu1 %v441_v35 }
 0x32d   :  { %v536_v17 = vpop.f32.mrf.mxu0 }
 0x32e   :  { %v565_v36 = vpop.f32.mrf.mxu1 }
 0x333   :  { %v507_v37 = vpop.f32.mrf.mxu3 }
 0x335   :  { %v539_v39 = vpop.f32.mrf.mxu0 }
 0x336   :  { %v568_v19 = vpop.f32.mrf.mxu1 }
 0x33b   :  { %v510_v40 = vpop.f32.mrf.mxu3 }
 0x33d   :  { %v542_v52 = vpop.f32.mrf.mxu0 }
 0x33e   :  { %v571_v53 = vpop.f32.mrf.mxu1 }
 0x343   :  { %v513_v54 = vpop.f32.mrf.mxu3 }
 0x345   :  { %v545_v55 = vpop.f32.mrf.mxu0 }
 0x346   :  { %v574_v56 = vpop.f32.mrf.mxu1  ;;  %589 = vmatpush.msra.mxu2 %v545_v55 }
 0x347   :  { %647 = vmatpush.msrb.mxu3 %v574_v56 }
 0x348   :  { %590 = vmatpush.msra.mxu2 %v542_v52 }
 0x349   :  { %648 = vmatpush.msrb.mxu3 %v571_v53 }
 0x34a   :  { %591 = vmatpush.msra.mxu2 %v539_v39 }
 0x34b   :  { %649 = vmatpush.msrb.mxu3 %v568_v19  ;;  %v516_v29 = vpop.f32.mrf.mxu3 }
 0x34c   :  { %592 = vmatpush.msra.mxu2 %v536_v17 }
 0x34d   :  { %650 = vmatpush.msrb.mxu3 %v565_v36  ;;  %838 = vmatmul.msk.f32.vlgmr.msra.gmra.mxu2 %vm178_vm1, %v1028_v41 }
 0x34e   :  { %618 = vmatpush.msrb.mxu2 %v516_v29  ;;  %846 = vmatmul.msk.f32.vlgmr.msrb.gmra.mxu3 %vm178_vm1, %v1042_v43 }
 0x350   :  { %619 = vmatpush.msrb.mxu2 %v513_v54 }
 0x352   :  { %620 = vmatpush.msrb.mxu2 %v510_v40 }
 0x354   :  { %621 = vmatpush.msrb.mxu2 %v507_v37 }
 0x355   :  { %839 = vmatmul.msk.f32.gmra.mxu2 %vm178_vm1, %v1023_v38 }
 0x356   :  { %847 = vmatmul.msk.f32.gmra.mxu3 %vm178_vm1, %v1056_v45  ;;  %v704_v45 = vld [vmem:[%s1460_s6 + $0x68] sm:$0xff] }
 0x35d   :  { %840 = vmatmul.msk.f32.gmra.mxu2 %vm178_vm1, %v1037_v42  ;;  %v706_v42 = vld [vmem:[%s1460_s6 + $0x78] sm:$0xff] }
 0x35e   :  { %848 = vmatmul.msk.f32.gmra.mxu3 %vm178_vm1, %v1070_v47  ;;  %707 = vmatpush.msra.mxu0 %v706_v42  ;;  %v702_v47 = vld [vmem:[%s1460_s6 + $0x58] sm:$0xff]  ;;  %v759_v42 = vld [vmem:[%s1461_s7] sm:$0xff] }
 0x35f   :  { %778 = vmatpush.msrb.mxu1 %v759_v42 }
 0x365   :  { %841 = vmatmul.msk.f32.gmra.mxu2 %vm178_vm1, %v1051_v44  ;;  %v705_v44 = vld [vmem:[%s1460_s6 + $0x70] sm:$0xff] }
 0x366   :  { %849 = vmatmul.msk.f32.gmra.mxu3 %vm178_vm1, %v1084_v49  ;;  %708 = vmatpush.msra.mxu0 %v705_v44  ;;  %v701_v49 = vld [vmem:[%s1460_s6 + $0x50] sm:$0xff] }
 0x368   :  { %709 = vmatpush.msra.mxu0 %v704_v45 }
 0x36d   :  { %842 = vmatmul.msk.f32.vlgmr.msrb.gmra.mxu2 %vm178_vm1, %v1065_v46  ;;  %v703_v46 = vld [vmem:[%s1460_s6 + $0x60] sm:$0xff] }
 0x36e   :  { %710 = vmatpush.msra.mxu0 %v703_v46 }
 0x370   :  { %711 = vmatpush.msra.mxu0 %v702_v47 }
 0x372   :  { %712 = vmatpush.msra.mxu0 %v701_v49 }
 0x375   :  { %843 = vmatmul.msk.f32.gmra.mxu2 %vm178_vm1, %v1079_v48 }
 0x37d   :  { %844 = vmatmul.msk.f32.gmra.mxu2 %vm178_vm1, %v1093_v50 }
 0x385   :  { %845 = vmatmul.msk.f32.gmra.mxu2 %vm178_vm1, %v1100_v51  ;;  %v700_v51 = vld [vmem:[%s1460_s6 + $0x48] sm:$0xff] }
 0x386   :  { %713 = vmatpush.msra.mxu0 %v700_v51 }
 0x388   :  { %714 = vmatpush.msra.mxu0 %v699_v57 }
 0x38a   :  { %715 = vmatpush.msra.mxu0 %v698_v58  ;;  %v752_v58 = vld [vmem:[%s1463_s11] sm:$0x1] }
 0x38c   :  { %716 = vmatpush.msra.mxu0 %v697_v61 }
 0x38e   :  { %717 = vmatpush.msra.mxu0 %v696_v62 }
 0x390   :  { %718 = vmatpush.msra.mxu0 %v695_v0 }
 0x392   :  { %719 = vmatpush.msra.mxu0 %v694_v1 }
 0x394   :  { %720 = vmatpush.msra.mxu0 %v693_v2 }
 0x396   :  { %721 = vmatpush.msra.mxu0 %v692_v4 }
 0x398   :  { %722 = vmatpush.msra.mxu0 %v691_v5 }
 0x3d0   :  { %v594_v38 = vpop.f32.mrf.mxu2 }
 0x3d1   :  { %v652_v50 = vpop.f32.mrf.mxu3 }
 0x3d8   :  { %v597_v41 = vpop.f32.mrf.mxu2 }
 0x3d9   :  { %v655_v63 = vpop.f32.mrf.mxu3 }
 0x3e0   :  { %v600_v43 = vpop.f32.mrf.mxu2 }
 0x3e1   :  { %v658_v6 = vpop.f32.mrf.mxu3 }
 0x3e8   :  { %v603_v48 = vpop.f32.mrf.mxu2 }
 0x3e9   :  { %v661_v15 = vpop.f32.mrf.mxu3 }
 0x3f0   :  { %v623_v59 = vpop.f32.mrf.mxu2 }
 0x3f1   :  { %v624_v8 = vadd.f32 %v623_v59, %v594_v38 }
 0x3f3   :  { %v1412_v11 = vadd.f32 %v652_v50, %v624_v8  ;;  %v734_v50 = vld [vmem:[%s1462_s10] sm:$0x1] }
 0x3f5   :  { %v677_v16 = vmul.f32 %v1412_v11, %v1412_v11 }
 0x3f8   :  { %v626_v3 = vpop.f32.mrf.mxu2 }
 0x3f9   :  { %v627_v60 = vadd.f32 %v626_v3, %v597_v41 }
 0x3fb   :  { %v1410_v10 = vadd.f32 %v655_v63, %v627_v60 }
 0x3fd   :  { %v678_v13 = vmul.f32 %v1410_v10, %v1410_v10  ;;  %v668_v20 = vadd.f32 %v1410_v10, %v1412_v11 }
 0x3ff   :  { %v681_v23 = vadd.f32 %v678_v13, %v677_v16 }
 0x400   :  { %v629_v7 = vpop.f32.mrf.mxu2 }
 0x401   :  { %v630_v9 = vadd.f32 %v629_v7, %v600_v43 }
 0x403   :  { %v1414_v12 = vadd.f32 %v658_v6, %v630_v9 }
 0x405   :  { %v679_v21 = vmul.f32 %v1414_v12, %v1414_v12  ;;  %v669_v24 = vadd.f32 %v668_v20, %v1414_v12 }
 0x407   :  { %v682_v26 = vadd.f32 %v681_v23, %v679_v21 }
 0x408   :  { %v632_v14 = vpop.f32.mrf.mxu2 }
 0x409   :  { %v633_v22 = vadd.f32 %v632_v14, %v603_v48 }
 0x40b   :  { %v667_v25 = vadd.f32 %v661_v15, %v633_v22 }
 0x40d   :  { %v670_v27 = vadd.f32 %v669_v24, %v667_v25  ;;  %v680_v28 = vmul.f32 %v667_v25, %v667_v25 }
 0x40f   :  { %v671_v30 = vrot.slane %v670_v27, 4  ;;  %v683_v31 = vadd.f32 %v682_v26, %v680_v28 }
 0x411   :  { %v672_v32 = vadd.f32 %v671_v30, %v670_v27  ;;  %v684_v33 = vrot.slane %v683_v31, 4 }
 0x413   :  { %v673_v34 = vrot.slane %v672_v32, 2  ;;  %v685_v18 = vadd.f32 %v684_v33, %v683_v31 }
 0x415   :  { %v674_v35 = vadd.f32 %v673_v34, %v672_v32  ;;  %v686_v17 = vrot.slane %v685_v18, 2 }
 0x417   :  { %v675_v36 = vrot.slane %v674_v35, 1  ;;  %v687_v37 = vadd.f32 %v686_v17, %v685_v18 }
 0x419   :  { %v688_v39 = vrot.slane %v687_v37, 1  ;;  %v676_v19 = vadd.f32 %v675_v36, %v674_v35 }
 0x41b   :  { %v689_v40 = vadd.f32 %v688_v39, %v687_v37 }
 0x41d   :  { %v690_v52 = vsel %vm333_vm2, %v676_v19, %v689_v40 }
 0x41e   :  { %723 = vmatmul.f32.vlgmr.msra.gmra.mxu0 %v690_v52 }
 0x49b   :  { %v724_v53 = vpop.f32.mrf.mxu0 }
 0x49c   :  { %v727_v54 = vmul.f32 0.001953125, %v724_v53 }
 0x49e   :  { %v728_v55 = vmul.f32 %v727_v54, %v727_v54 }
 0x4a0   :  { %v730_v56 = vrot.slane %v728_v55, 7 }
 0x4a2   :  { %v732_v29 = vsub.f32 %v727_v54, %v730_v56 }
 0x4a4   :  { %v733_v38 = vmax.f32 %v732_v29, 0.0 }
 0x4a6   :  { %v735_v41 = vadd.f32 1e-05, %v733_v38 }
 0x4a8   :  { %857 = vrsqrt.f32 %v735_v41  ;;  %vm742_vm8 = vweird.f32 %v735_v41 }
 0x4ae   :  { %v858_v43 = vpop.eup %857 }
 0x4af   :  { %v737_v44 = vmul.f32 %v858_v43, %v735_v41  ;;  %vm743_vm7 = vweird.f32 %v858_v43 }
 0x4b0   :  { %vm744_vm9 = vmor %vm742_vm8, %vm743_vm7 }
 0x4b1   :  { %v738_v45 = vmul.f32 %v858_v43, %v737_v44 }
 0x4b3   :  { %v739_v46 = vmul.f32 0.5, %v738_v45 }
 0x4b5   :  { %v740_v47 = vsub.f32 1.5, %v739_v46 }
 0x4b7   :  { %v741_v48 = vmul.f32 %v858_v43, %v740_v47 }
 0x4b9   :  { %v745_v49 = vsel %vm744_vm9, %v858_v43, %v741_v48 }
 0x4ba   :  { %747 = vst [vmem:[#allocation1] sm:$0xff] %v745_v49 }
 0x4c1   :  { %v749_v51 = vld [vmem:[#allocation1 + $0x1] ss:$9 sm:$0xff] }
 0x4c2   :  { %v751_v57 = vmul.f32 %v749_v51, %v734_v50 }
 0x4c4   :  { %v753_v59 = vmul.f32 %v751_v57, %v727_v54 }
 0x4c6   :  { %v754_v61 = vsub.f32 %v752_v58, %v753_v59 }
 0x4c8   :  { %v756_v62 = vperm.slane %v754_v61, 0 }
 0x4ca   :  { %v758_v63 = vsel %vm333_vm2, %v751_v57, %v756_v62 }
 0x4cb   :  { %850 = vmatmul.msk.f32.vlgmr.msrb.gmra.mxu1 %vm404_vm6, %v758_v63 }
 0x548   :  { %v780_v0 = vpop.f32.mrf.mxu1 }
 0x549   :  { %v783_v1 = vperm.slane %v780_v0, 0  ;;  %v788_v2 = vperm.slane %v780_v0, 1 }
 0x54b   :  { %v784_v3 = vmul.f32 %v783_v1, %v1412_v11  ;;  %v785_v4 = vmul.f32 %v783_v1, %v1410_v10  ;;  %v786_v5 = vmul.f32 %v783_v1, %v1414_v12  ;;  %v787_v6 = vmul.f32 %v783_v1, %v667_v25 }
 0x54d   :  { %v789_v60 = vadd.f32 %v788_v2, %v784_v3  ;;  %v790_v7 = vadd.f32 %v788_v2, %v785_v4  ;;  %v791_v8 = vadd.f32 %v788_v2, %v786_v5  ;;  %v792_v9 = vadd.f32 %v788_v2, %v787_v6 }
 0x54f   :  { %v793_v13 = vmax.f32 %v789_v60, 0.0  ;;  %v794_v14 = vmax.f32 %v790_v7, 0.0  ;;  %v795_v15 = vmax.f32 %v791_v8, 0.0  ;;  %v796_v16 = vmax.f32 %v792_v9, 0.0 }
 0x551   :  { %797 = vst [vmem:[%s1464_s12] sm:$0xff] %v793_v13 }
 0x552   :  { %798 = vst [vmem:[%s1464_s12 + $0x8] sm:$0xff] %v794_v14 }
 0x553   :  { %799 = vst [vmem:[%s1464_s12 + $0x10] sm:$0xff] %v795_v15 }
 0x554   :  { %800 = vst [vmem:[%s1464_s12 + $0x18] sm:$0xff] %v796_v16 }

</bundles_post_ra>
